<compile_context>
chip_gen: v7x
topology: tpu7x:2x2x1
jax: 0.10.0
libtpu: 0.0.40
codegen_flags: <defaults>
</compile_context>

<pallas_src>
import functools

import jax
import jax.numpy as jnp
from jax.experimental import pallas as pl
from jax.experimental.pallas import tpu as pltpu


NEG_SLOPE = 0.01      # F.leaky_relu default negative_slope
HIDDEN = 128
N_OUT = 8


def _leaky_relu(x):
    return jnp.where(x > 0, x, NEG_SLOPE * x)


def classifier_kernel(
    x_ref,
    w1_ref, b1_ref,
    w2_ref, b2_ref,
    w3_ref, b3_ref,
    w4_ref, b4_ref,
    w5_ref, b5_ref,
    o_ref,
):
    """Fused 5-layer MLP on one batch tile.

    Weights are bf16 (MXU-native); matmuls accumulate in f32; bias add and
    leaky_relu happen in f32; activations are re-cast to bf16 between layers.
    """
    # In-kernel cast is free (VPU slack). Callers that can produce x in bf16
    # upstream halve input HBM traffic and this becomes a no-op — do NOT add a
    # standalone wrapper-side astype (separate un-fused XLA pass).
    h = x_ref[...].astype(jnp.bfloat16)
    for w_ref, b_ref in (
        (w1_ref, b1_ref),
        (w2_ref, b2_ref),
        (w3_ref, b3_ref),
        (w4_ref, b4_ref),
    ):
        z = jnp.dot(h, w_ref[...], preferred_element_type=jnp.float32) + b_ref[...]
        h = _leaky_relu(z).astype(jnp.bfloat16)

    # Final layer (no activation): (blk,128) x (128,8) -> (blk,8) f32,
    # stored directly into the 8-wide output tile.
    out = jnp.dot(h, w5_ref[...], preferred_element_type=jnp.float32) + b5_ref[...]
    o_ref[...] = out.astype(o_ref.dtype)


def _round_up(n, m):
    return ((n + m - 1) // m) * m


@functools.partial(jax.jit, static_argnames=("block_b",))
def classifier_forward(x, params, block_b=2048):
    """x: (B, 128) float32 (or bfloat16).  params: (in,out) weights, (1,out) biases."""
    B, D = x.shape
    assert D == HIDDEN

    # Batch tile: multiple of 8 (sublane), capped at block_b, and sized so a
    # large batch yields >=4 grid steps (megacore load balance on v7x,
    # per-step overhead amortization on v5e/v6e).
    blk = max(8, min(block_b, _round_up(-(-B // 4), 8)))
    grid = pl.cdiv(B, blk)  # ragged last tile handled by Pallas boundary masking

    # bf16 weights for MXU-native throughput; biases stay f32 (added post-acc).
    ws = [params[f"w{i}"].astype(jnp.bfloat16) for i in range(1, 6)]
    bs = [params[f"b{i}"].astype(jnp.float32) for i in range(1, 6)]

    def wspec(arr):
        # Constant index_map -> fetched once and kept resident in VMEM
        # (~132 KiB bf16 total across all layers).
        return pl.BlockSpec(arr.shape, lambda i: (0, 0))

    in_specs = [pl.BlockSpec((blk, D), lambda i: (i, 0))]  # batch tile of x
    operands = [x]
    for w, b in zip(ws, bs):
        in_specs += [wspec(w), wspec(b)]
        operands += [w, b]

    out = pl.pallas_call(
        classifier_kernel,
        out_shape=jax.ShapeDtypeStruct((B, N_OUT), jnp.float32),
        grid_spec=pltpu.PrefetchScalarGridSpec(
            num_scalar_prefetch=0,
            grid=(grid,),
            in_specs=in_specs,
            out_specs=pl.BlockSpec((blk, N_OUT), lambda i: (i, 0)),
        ),
        compiler_params=pltpu.CompilerParams(
            dimension_semantics=("parallel",),  # batch tiles shard across TCs on v7x
        ),
    )(*operands)

    return out


def init_params(key):
    """Deterministic synthetic parameters with nn.Linear-style uniform init.

    Weights stored (in, out) in f32 (cast to bf16 at call time); biases (1, out).
    """
    dims = [(HIDDEN, HIDDEN)] * 4 + [(HIDDEN, N_OUT)]
    params = {}
    for idx, (fan_in, fan_out) in enumerate(dims, start=1):
        key, kw, kb = jax.random.split(key, 3)
        bound = 1.0 / jnp.sqrt(fan_in)
        params[f"w{idx}"] = jax.random.uniform(
            kw, (fan_in, fan_out), jnp.float32, minval=-bound, maxval=bound
        )
        params[f"b{idx}"] = jax.random.uniform(
            kb, (1, fan_out), jnp.float32, minval=-bound, maxval=bound
        )
    return params


def reference_forward(x, params):
    """Pure-JAX f32 reference for correctness check."""
    h = x
    for i in range(1, 5):
        h = jnp.dot(h, params[f"w{i}"]) + params[f"b{i}"]
        h = jnp.where(h > 0, h, NEG_SLOPE * h)
    return jnp.dot(h, params["w5"]) + params["b5"]


if __name__ == "__main__":
    key = jax.random.PRNGKey(0)
    key, kx = jax.random.split(key)
    params = init_params(key)

    # Small single-tile check.
    B = 8
    x = jax.random.normal(kx, (B, HIDDEN), jnp.float32)
    out = jax.block_until_ready(classifier_forward(x, params))
    ref = reference_forward(x, params)
    assert out.shape == (B, N_OUT), out.shape
    # bf16 operands / f32 accumulation -> relaxed tolerance vs f32 reference.
    assert jnp.allclose(out, ref, atol=5e-2, rtol=5e-2), "mismatch vs reference"

    # Ragged multi-tile grid check (exercises boundary masking + parallel grid).
    key, kx2 = jax.random.split(key)
    B2 = 200
    x2 = jax.random.normal(kx2, (B2, HIDDEN), jnp.float32)
    out2 = jax.block_until_ready(classifier_forward(x2, params, block_b=64))
    ref2 = reference_forward(x2, params)
    assert out2.shape == (B2, N_OUT), out2.shape
    assert jnp.allclose(out2, ref2, atol=5e-2, rtol=5e-2), "mismatch vs reference (ragged)"

    print("KERNEL_OK")
</pallas_src>

<mosaic_0001>
module attributes {stable_mosaic.version = 11 : i64} {
  func.func @classifier_kernel(%arg0: i32, %arg1: memref<8x128xf32, #tpu.memory_space<vmem>>, %arg2: memref<128x128xbf16, #tpu.memory_space<vmem>>, %arg3: memref<1x128xf32, #tpu.memory_space<vmem>>, %arg4: memref<128x128xbf16, #tpu.memory_space<vmem>>, %arg5: memref<1x128xf32, #tpu.memory_space<vmem>>, %arg6: memref<128x128xbf16, #tpu.memory_space<vmem>>, %arg7: memref<1x128xf32, #tpu.memory_space<vmem>>, %arg8: memref<128x128xbf16, #tpu.memory_space<vmem>>, %arg9: memref<1x128xf32, #tpu.memory_space<vmem>>, %arg10: memref<128x8xbf16, #tpu.memory_space<vmem>>, %arg11: memref<1x8xf32, #tpu.memory_space<vmem>>, %arg12: memref<8x8xf32, #tpu.memory_space<vmem>>) attributes {dimension_semantics = [#tpu.dimension_semantics<parallel>], iteration_bounds = array<i64: 1>, scalar_prefetch = 0 : i64, scratch_operands = 0 : i64, tpu.core_type = #tpu.core_type<tc>, window_params = [{transform_indices = @transform_0, window_bounds = array<i64: 8, 128>}, {pipeline_mode = #tpu.pipeline_mode<synchronous>, transform_indices = @transform_1, window_bounds = array<i64: 128, 128>}, {pipeline_mode = #tpu.pipeline_mode<synchronous>, transform_indices = @transform_2, window_bounds = array<i64: 1, 128>}, {pipeline_mode = #tpu.pipeline_mode<synchronous>, transform_indices = @transform_3, window_bounds = array<i64: 128, 128>}, {pipeline_mode = #tpu.pipeline_mode<synchronous>, transform_indices = @transform_4, window_bounds = array<i64: 1, 128>}, {pipeline_mode = #tpu.pipeline_mode<synchronous>, transform_indices = @transform_5, window_bounds = array<i64: 128, 128>}, {pipeline_mode = #tpu.pipeline_mode<synchronous>, transform_indices = @transform_6, window_bounds = array<i64: 1, 128>}, {pipeline_mode = #tpu.pipeline_mode<synchronous>, transform_indices = @transform_7, window_bounds = array<i64: 128, 128>}, {pipeline_mode = #tpu.pipeline_mode<synchronous>, transform_indices = @transform_8, window_bounds = array<i64: 1, 128>}, {pipeline_mode = #tpu.pipeline_mode<synchronous>, transform_indices = @transform_9, window_bounds = array<i64: 128, 8>}, {pipeline_mode = #tpu.pipeline_mode<synchronous>, transform_indices = @transform_10, window_bounds = array<i64: 1, 8>}, {transform_indices = @transform_11, window_bounds = array<i64: 8, 8>}]} {
    %c0 = arith.constant 0 : index
    %c0_0 = arith.constant 0 : index
    %0 = vector.load %arg1[%c0, %c0_0] : memref<8x128xf32, #tpu.memory_space<vmem>>, vector<8x128xf32>
    %1 = arith.truncf %0 : vector<8x128xf32> to vector<8x128xbf16>
    %c0_1 = arith.constant 0 : index
    %c0_2 = arith.constant 0 : index
    %2 = vector.load %arg2[%c0_1, %c0_2] : memref<128x128xbf16, #tpu.memory_space<vmem>>, vector<128x128xbf16>
    %cst = arith.constant dense<0.000000e+00> : vector<8x128xf32>
    %3 = tpu.matmul %1, %2, %cst {dimension_numbers = #tpu.dot_dimension_numbers<[1], [0], [0], [1], [0, 0, 1, 1], [], []>} : vector<8x128xbf16>, vector<128x128xbf16>, vector<8x128xf32> -> vector<8x128xf32>
    %c0_3 = arith.constant 0 : index
    %c0_4 = arith.constant 0 : index
    %4 = vector.load %arg3[%c0_3, %c0_4] : memref<1x128xf32, #tpu.memory_space<vmem>>, vector<1x128xf32>
    %5 = vector.broadcast %4 : vector<1x128xf32> to vector<8x128xf32>
    %6 = arith.addf %3, %5 : vector<8x128xf32>
    %cst_5 = arith.constant 0.000000e+00 : f32
    %7 = vector.broadcast %cst_5 : f32 to vector<8x128xf32>
    %8 = arith.cmpf ogt, %6, %7 : vector<8x128xf32>
    %cst_6 = arith.constant 0.00999999977 : f32
    %9 = vector.broadcast %cst_6 : f32 to vector<8x128xf32>
    %10 = arith.mulf %9, %6 : vector<8x128xf32>
    %11 = arith.select %8, %6, %10 : vector<8x128xi1>, vector<8x128xf32>
    %12 = arith.truncf %11 : vector<8x128xf32> to vector<8x128xbf16>
    %c0_7 = arith.constant 0 : index
    %c0_8 = arith.constant 0 : index
    %13 = vector.load %arg4[%c0_7, %c0_8] : memref<128x128xbf16, #tpu.memory_space<vmem>>, vector<128x128xbf16>
    %cst_9 = arith.constant dense<0.000000e+00> : vector<8x128xf32>
    %14 = tpu.matmul %12, %13, %cst_9 {dimension_numbers = #tpu.dot_dimension_numbers<[1], [0], [0], [1], [0, 0, 1, 1], [], []>} : vector<8x128xbf16>, vector<128x128xbf16>, vector<8x128xf32> -> vector<8x128xf32>
    %c0_10 = arith.constant 0 : index
    %c0_11 = arith.constant 0 : index
    %15 = vector.load %arg5[%c0_10, %c0_11] : memref<1x128xf32, #tpu.memory_space<vmem>>, vector<1x128xf32>
    %16 = vector.broadcast %15 : vector<1x128xf32> to vector<8x128xf32>
    %17 = arith.addf %14, %16 : vector<8x128xf32>
    %cst_12 = arith.constant 0.000000e+00 : f32
    %18 = vector.broadcast %cst_12 : f32 to vector<8x128xf32>
    %19 = arith.cmpf ogt, %17, %18 : vector<8x128xf32>
    %cst_13 = arith.constant 0.00999999977 : f32
    %20 = vector.broadcast %cst_13 : f32 to vector<8x128xf32>
    %21 = arith.mulf %20, %17 : vector<8x128xf32>
    %22 = arith.select %19, %17, %21 : vector<8x128xi1>, vector<8x128xf32>
    %23 = arith.truncf %22 : vector<8x128xf32> to vector<8x128xbf16>
    %c0_14 = arith.constant 0 : index
    %c0_15 = arith.constant 0 : index
    %24 = vector.load %arg6[%c0_14, %c0_15] : memref<128x128xbf16, #tpu.memory_space<vmem>>, vector<128x128xbf16>
    %cst_16 = arith.constant dense<0.000000e+00> : vector<8x128xf32>
    %25 = tpu.matmul %23, %24, %cst_16 {dimension_numbers = #tpu.dot_dimension_numbers<[1], [0], [0], [1], [0, 0, 1, 1], [], []>} : vector<8x128xbf16>, vector<128x128xbf16>, vector<8x128xf32> -> vector<8x128xf32>
    %c0_17 = arith.constant 0 : index
    %c0_18 = arith.constant 0 : index
    %26 = vector.load %arg7[%c0_17, %c0_18] : memref<1x128xf32, #tpu.memory_space<vmem>>, vector<1x128xf32>
    %27 = vector.broadcast %26 : vector<1x128xf32> to vector<8x128xf32>
    %28 = arith.addf %25, %27 : vector<8x128xf32>
    %cst_19 = arith.constant 0.000000e+00 : f32
    %29 = vector.broadcast %cst_19 : f32 to vector<8x128xf32>
    %30 = arith.cmpf ogt, %28, %29 : vector<8x128xf32>
    %cst_20 = arith.constant 0.00999999977 : f32
    %31 = vector.broadcast %cst_20 : f32 to vector<8x128xf32>
    %32 = arith.mulf %31, %28 : vector<8x128xf32>
    %33 = arith.select %30, %28, %32 : vector<8x128xi1>, vector<8x128xf32>
    %34 = arith.truncf %33 : vector<8x128xf32> to vector<8x128xbf16>
    %c0_21 = arith.constant 0 : index
    %c0_22 = arith.constant 0 : index
    %35 = vector.load %arg8[%c0_21, %c0_22] : memref<128x128xbf16, #tpu.memory_space<vmem>>, vector<128x128xbf16>
    %cst_23 = arith.constant dense<0.000000e+00> : vector<8x128xf32>
    %36 = tpu.matmul %34, %35, %cst_23 {dimension_numbers = #tpu.dot_dimension_numbers<[1], [0], [0], [1], [0, 0, 1, 1], [], []>} : vector<8x128xbf16>, vector<128x128xbf16>, vector<8x128xf32> -> vector<8x128xf32>
    %c0_24 = arith.constant 0 : index
    %c0_25 = arith.constant 0 : index
    %37 = vector.load %arg9[%c0_24, %c0_25] : memref<1x128xf32, #tpu.memory_space<vmem>>, vector<1x128xf32>
    %38 = vector.broadcast %37 : vector<1x128xf32> to vector<8x128xf32>
    %39 = arith.addf %36, %38 : vector<8x128xf32>
    %cst_26 = arith.constant 0.000000e+00 : f32
    %40 = vector.broadcast %cst_26 : f32 to vector<8x128xf32>
    %41 = arith.cmpf ogt, %39, %40 : vector<8x128xf32>
    %cst_27 = arith.constant 0.00999999977 : f32
    %42 = vector.broadcast %cst_27 : f32 to vector<8x128xf32>
    %43 = arith.mulf %42, %39 : vector<8x128xf32>
    %44 = arith.select %41, %39, %43 : vector<8x128xi1>, vector<8x128xf32>
    %45 = arith.truncf %44 : vector<8x128xf32> to vector<8x128xbf16>
    %c0_28 = arith.constant 0 : index
    %c0_29 = arith.constant 0 : index
    %46 = vector.load %arg10[%c0_28, %c0_29] : memref<128x8xbf16, #tpu.memory_space<vmem>>, vector<128x8xbf16>
    %cst_30 = arith.constant dense<0.000000e+00> : vector<8x8xf32>
    %47 = tpu.matmul %45, %46, %cst_30 {dimension_numbers = #tpu.dot_dimension_numbers<[1], [0], [0], [1], [0, 0, 1, 1], [], []>} : vector<8x128xbf16>, vector<128x8xbf16>, vector<8x8xf32> -> vector<8x8xf32>
    %c0_31 = arith.constant 0 : index
    %c0_32 = arith.constant 0 : index
    %48 = vector.load %arg11[%c0_31, %c0_32] : memref<1x8xf32, #tpu.memory_space<vmem>>, vector<1x8xf32>
    %49 = vector.broadcast %48 : vector<1x8xf32> to vector<8x8xf32>
    %50 = arith.addf %47, %49 : vector<8x8xf32>
    %c0_33 = arith.constant 0 : index
    %c0_34 = arith.constant 0 : index
    %51 = vector.load %arg12[%c0_33, %c0_34] : memref<8x8xf32, #tpu.memory_space<vmem>>, vector<8x8xf32>
    tpu.vector_store %arg12[%c0_33, %c0_34], %50 {strides = array<i32>} : memref<8x8xf32, #tpu.memory_space<vmem>>, vector<8x8xf32>,
    return
  }
  func.func @transform_0(%arg0: i32) -> (i32, i32) {
    %c0_i32 = arith.constant 0 : i32
    %c0_i32_0 = arith.constant 0 : i32
    return %arg0, %c0_i32 : i32, i32
  }
  func.func @transform_1(%arg0: i32) -> (i32, i32) {
    %c0_i32 = arith.constant 0 : i32
    %c0_i32_0 = arith.constant 0 : i32
    %c0_i32_1 = arith.constant 0 : i32
    return %c0_i32, %c0_i32_0 : i32, i32
  }
  func.func @transform_2(%arg0: i32) -> (i32, i32) {
    %c0_i32 = arith.constant 0 : i32
    %c0_i32_0 = arith.constant 0 : i32
    %c0_i32_1 = arith.constant 0 : i32
    return %c0_i32, %c0_i32_0 : i32, i32
  }
  func.func @transform_3(%arg0: i32) -> (i32, i32) {
    %c0_i32 = arith.constant 0 : i32
    %c0_i32_0 = arith.constant 0 : i32
    %c0_i32_1 = arith.constant 0 : i32
    return %c0_i32, %c0_i32_0 : i32, i32
  }
  func.func @transform_4(%arg0: i32) -> (i32, i32) {
    %c0_i32 = arith.constant 0 : i32
    %c0_i32_0 = arith.constant 0 : i32
    %c0_i32_1 = arith.constant 0 : i32
    return %c0_i32, %c0_i32_0 : i32, i32
  }
  func.func @transform_5(%arg0: i32) -> (i32, i32) {
    %c0_i32 = arith.constant 0 : i32
    %c0_i32_0 = arith.constant 0 : i32
    %c0_i32_1 = arith.constant 0 : i32
    return %c0_i32, %c0_i32_0 : i32, i32
  }
  func.func @transform_6(%arg0: i32) -> (i32, i32) {
    %c0_i32 = arith.constant 0 : i32
    %c0_i32_0 = arith.constant 0 : i32
    %c0_i32_1 = arith.constant 0 : i32
    return %c0_i32, %c0_i32_0 : i32, i32
  }
  func.func @transform_7(%arg0: i32) -> (i32, i32) {
    %c0_i32 = arith.constant 0 : i32
    %c0_i32_0 = arith.constant 0 : i32
    %c0_i32_1 = arith.constant 0 : i32
    return %c0_i32, %c0_i32_0 : i32, i32
  }
  func.func @transform_8(%arg0: i32) -> (i32, i32) {
    %c0_i32 = arith.constant 0 : i32
    %c0_i32_0 = arith.constant 0 : i32
    %c0_i32_1 = arith.constant 0 : i32
    return %c0_i32, %c0_i32_0 : i32, i32
  }
  func.func @transform_9(%arg0: i32) -> (i32, i32) {
    %c0_i32 = arith.constant 0 : i32
    %c0_i32_0 = arith.constant 0 : i32
    %c0_i32_1 = arith.constant 0 : i32
    return %c0_i32, %c0_i32_0 : i32, i32
  }
  func.func @transform_10(%arg0: i32) -> (i32, i32) {
    %c0_i32 = arith.constant 0 : i32
    %c0_i32_0 = arith.constant 0 : i32
    %c0_i32_1 = arith.constant 0 : i32
    return %c0_i32, %c0_i32_0 : i32, i32
  }
  func.func @transform_11(%arg0: i32) -> (i32, i32) {
    %c0_i32 = arith.constant 0 : i32
    %c0_i32_0 = arith.constant 0 : i32
    return %arg0, %c0_i32 : i32, i32
  }
}

</mosaic_0001>

<bundles_post_ra>
// kernel: classifier_forward.1
= control target key start
LH: loop header
LB: loop body
LE: loop exit
PB: predicated region body
PF: predicated region fallthrough
CT: control target
= control target key end

     0   :  { %v886_v1 = vmov 0.0   ;;  %vm887_vm0 = vmmov 0   ;;  %s1149_s0 = inlined_call_operand.vmem [shape: f32[8,128], index: 0, kind: input, shape index: {}]   ;;  %s1150_s1 = inlined_call_operand.vmem [shape: bf16[128,128], index: 1, kind: input, shape index: {}]   ;;  %s1151_s2 = inlined_call_operand.vmem [shape: f32[1,128], index: 2, kind: input, shape index: {}]   ;;  %s1152_s3 = inlined_call_operand.vmem [shape: bf16[128,128], index: 3, kind: input, shape index: {}]   ;;  %s1153_s4 = inlined_call_operand.vmem [shape: f32[1,128], index: 4, kind: input, shape index: {}]   ;;  %s1154_s5 = inlined_call_operand.vmem [shape: bf16[128,128], index: 5, kind: input, shape index: {}]   ;;  %s1155_s6 = inlined_call_operand.vmem [shape: f32[1,128], index: 6, kind: input, shape index: {}]   ;;  %s1156_s7 = inlined_call_operand.vmem [shape: bf16[128,128], index: 7, kind: input, shape index: {}]   ;;  %s1157_s8 = inlined_call_operand.vmem [shape: f32[1,128], index: 8, kind: input, shape index: {}]   ;;  %s1158_s9 = inlined_call_operand.vmem [shape: bf16[128,8], index: 9, kind: input, shape index: {}]   ;;  %s1159_s10 = inlined_call_operand.vmem [shape: f32[1,8], index: 10, kind: input, shape index: {}]   ;;  %s1160_s11 = inlined_call_operand.hbm [shape: f32[8,8], index: 11, kind: output, shape index: {}]  }
   0x1   :  { %v822_v0 = vld [vmem:[%s1150_s1] sm:$0xff]   ;;  %719 = vmatprep.subr.bf16.mxu0 %v886_v1  ;;  %739 = vmatprep.subr.bf16.mxu1 %v886_v1  ;;  %v823_v2 = vld [vmem:[%s1150_s1 + $0x8] sm:$0xff]   ;;  %v824_v3 = vld [vmem:[%s1150_s1 + $0x10] sm:$0xff]  }
   0x2   :  { %720 = vmatpush3.bf16.msra.mxu0 %v822_v0  ;;  %735 = vmatprep.mubr.msk.bf16.mxu0 %vm887_vm0, %v886_v1  ;;  %v830_v4 = vld [vmem:[%s1152_s3] sm:$0xff]   ;;  %v825_v5 = vld [vmem:[%s1150_s1 + $0x18] sm:$0xff]   ;;  %v831_v6 = vld [vmem:[%s1152_s3 + $0x8] sm:$0xff]  }
   0x3   :  { %721 = vmatprep.subr.bf16.mxu0 %v886_v1  ;;  %755 = vmatprep.mubr.msk.bf16.mxu1 %vm887_vm0, %v886_v1  ;;  %v826_v7 = vld [vmem:[%s1150_s1 + $0x20] sm:$0xff]   ;;  %v832_v8 = vld [vmem:[%s1152_s3 + $0x10] sm:$0xff]   ;;  %v827_v9 = vld [vmem:[%s1150_s1 + $0x28] sm:$0xff]  }
   0x4   :  { %740 = vmatpush3.bf16.msra.mxu1 %v830_v4  ;;  %v833_v10 = vld [vmem:[%s1152_s3 + $0x18] sm:$0xff]   ;;  %v828_v11 = vld [vmem:[%s1150_s1 + $0x30] sm:$0xff]   ;;  %v834_v12 = vld [vmem:[%s1152_s3 + $0x20] sm:$0xff]  }
   0x5   :  { %741 = vmatprep.subr.bf16.mxu1 %v886_v1  ;;  %v829_v13 = vld [vmem:[%s1150_s1 + $0x38] sm:$0xff]   ;;  %v40_v14 = vld [vmem:[%s1149_s0] sm:$0xff]  ;;  %v835_v15 = vld [vmem:[%s1152_s3 + $0x28] sm:$0xff]  }
   0x6   :  { %722 = vmatpush3.bf16.msra.mxu0 %v823_v2  ;;  %v41_v16 = vpack.c.bf16 %v40_v14, %v40_v14 }
   0x7   :  { %723 = vmatprep.subr.bf16.mxu0 %v886_v1 }
   0x8   :  { %742 = vmatpush3.bf16.msra.mxu1 %v831_v6 }
   0x9   :  { %743 = vmatprep.subr.bf16.mxu1 %v886_v1 }
   0xa   :  { %724 = vmatpush3.bf16.msra.mxu0 %v824_v3 }
   0xb   :  { %725 = vmatprep.subr.bf16.mxu0 %v886_v1 }
   0xc   :  { %744 = vmatpush3.bf16.msra.mxu1 %v832_v8 }
   0xd   :  { %745 = vmatprep.subr.bf16.mxu1 %v886_v1 }
   0xe   :  { %726 = vmatpush3.bf16.msra.mxu0 %v825_v5 }
   0xf   :  { %727 = vmatprep.subr.bf16.mxu0 %v886_v1 }
  0x10   :  { %746 = vmatpush3.bf16.msra.mxu1 %v833_v10 }
  0x11   :  { %747 = vmatprep.subr.bf16.mxu1 %v886_v1 }
  0x12   :  { %728 = vmatpush3.bf16.msra.mxu0 %v826_v7 }
  0x13   :  { %729 = vmatprep.subr.bf16.mxu0 %v886_v1 }
  0x14   :  { %748 = vmatpush3.bf16.msra.mxu1 %v834_v12 }
  0x15   :  { %749 = vmatprep.subr.bf16.mxu1 %v886_v1 }
  0x16   :  { %730 = vmatpush3.bf16.msra.mxu0 %v827_v9 }
  0x17   :  { %731 = vmatprep.subr.bf16.mxu0 %v886_v1 }
  0x18   :  { %750 = vmatpush3.bf16.msra.mxu1 %v835_v15 }
  0x19   :  { %751 = vmatprep.subr.bf16.mxu1 %v886_v1 }
  0x1a   :  { %732 = vmatpush3.bf16.msra.mxu0 %v828_v11 }
  0x1b   :  { %733 = vmatprep.subr.bf16.mxu0 %v886_v1 }
  0x1e   :  { %734 = vmatpush3.bf16.msra.mxu0 %v829_v13 }
  0x1f   :  { %759 = vmatprep.subr.bf16.mxu0 %v886_v1 }
  0x20   :  { %16 = vsyncpa [#allocation3], 0  ;;  %v836_v17 = vld [vmem:[%s1152_s3 + $0x30] sm:$0xff]   ;;  %v837_v18 = vld [vmem:[%s1152_s3 + $0x38] sm:$0xff]   ;;  %vm613_vm5 = vcmask 64512  }
  0x21   :  { %736 = vmatmul.mubr.bf16.vlgmr.msra.gmra.mrb[0].mxu0 %v41_v16  ;;  %752 = vmatpush3.bf16.msra.mxu1 %v836_v17  ;;  %v838_v19 = vld [vmem:[%s1154_s5] sm:$0xff]   ;;  %v839_v20 = vld [vmem:[%s1154_s5 + $0x8] sm:$0xff]   ;;  %v840_v21 = vld [vmem:[%s1154_s5 + $0x10] sm:$0xff]  }
  0x22   :  { %775 = vmatprep.mubr.msk.bf16.mxu0 %vm887_vm0, %v886_v1  ;;  %753 = vmatprep.subr.bf16.mxu1 %v886_v1  ;;  %v841_v22 = vld [vmem:[%s1154_s5 + $0x18] sm:$0xff]   ;;  %v842_v23 = vld [vmem:[%s1154_s5 + $0x20] sm:$0xff]   ;;  %v843_v24 = vld [vmem:[%s1154_s5 + $0x28] sm:$0xff]  }
  0x23   :  { %760 = vmatpush3.bf16.msra.mxu0 %v838_v19  ;;  %v629_v25 = vld [vmem:[%s1151_s2] ss:$0 sm:$0xff]  ;;  %v844_v34 = vld [vmem:[%s1154_s5 + $0x30] sm:$0xff]   ;;  %v845_v35 = vld [vmem:[%s1154_s5 + $0x38] sm:$0xff]  }
  0x24   :  { %761 = vmatprep.subr.bf16.mxu0 %v886_v1  ;;  %v846_v36 = vld [vmem:[%s1156_s7] sm:$0xff]   ;;  %v847_v37 = vld [vmem:[%s1156_s7 + $0x8] sm:$0xff]   ;;  %v848_v38 = vld [vmem:[%s1156_s7 + $0x10] sm:$0xff]  }
  0x25   :  { %754 = vmatpush3.bf16.msra.mxu1 %v837_v18  ;;  %v849_v39 = vld [vmem:[%s1156_s7 + $0x18] sm:$0xff]   ;;  %v850_v40 = vld [vmem:[%s1156_s7 + $0x20] sm:$0xff]   ;;  %v851_v41 = vld [vmem:[%s1156_s7 + $0x28] sm:$0xff]  }
  0x26   :  { %779 = vmatprep.subr.bf16.mxu1 %v886_v1  ;;  %v638_v42 = vld [vmem:[%s1153_s4] ss:$0 sm:$0xff]  ;;  %v852_v51 = vld [vmem:[%s1156_s7 + $0x30] sm:$0xff]   ;;  %v853_v52 = vld [vmem:[%s1156_s7 + $0x38] sm:$0xff]  }
  0x27   :  { %762 = vmatpush3.bf16.msra.mxu0 %v839_v20  ;;  %v854_v53 = vld [vmem:[%s1158_s9] sm:$0xff]   ;;  %v855_v54 = vld [vmem:[%s1158_s9 + $0x8] sm:$0xff]   ;;  %v856_v55 = vld [vmem:[%s1158_s9 + $0x10] sm:$0xff]  }
  0x28   :  { %763 = vmatprep.subr.bf16.mxu0 %v886_v1  ;;  %v857_v56 = vld [vmem:[%s1158_s9 + $0x18] sm:$0xff]   ;;  %v858_v57 = vld [vmem:[%s1158_s9 + $0x20] sm:$0xff]   ;;  %v859_v58 = vld [vmem:[%s1158_s9 + $0x28] sm:$0xff]  }
  0x29   :  { %v647_v59 = vld [vmem:[%s1155_s6] ss:$0 sm:$0xff]  ;;  %v860_v5 = vld [vmem:[%s1158_s9 + $0x30] sm:$0xff]   ;;  %v861_v6 = vld [vmem:[%s1158_s9 + $0x38] sm:$0xff]   ;;  %s888_s9 = smov [#allocation2]  }
  0x2a   :  { %v656_v7 = vld [vmem:[%s1157_s8] ss:$0 sm:$0xff]  ;;  %s621_s17 = sshll.u32 %s888_s9, 4  ;;  %s622_s17 = int_to_ptr.vmem [resolvable:$true] %s621_s17 }
  0x2b   :  { %764 = vmatpush3.bf16.msra.mxu0 %v840_v21  ;;  %s862_s8 = scalar_lea.vmem %s622_s17, 128  ;;  %p867_p1 = scmp.lt.s32.totalorder %s622_s17, %s622_s17 }
  0x2c   :  { %765 = vmatprep.subr.bf16.mxu0 %v886_v1  ;;  %p863_p0 = scmp.ne.s32.totalorder %s622_s17, %s862_s8  ;;  %p868_p2 = scmp.lt.s32.totalorder %s862_s8, %s862_s8 }
  0x2e   :  { %p869_p3 = por %p868_p2, %p867_p1 }
  0x2f   :  { %766 = vmatpush3.bf16.msra.mxu0 %v841_v22 }
  0x30   :  { %767 = vmatprep.subr.bf16.mxu0 %v886_v1  ;;  %p870_p4 = pnand %p869_p3, %p863_p0 }
  0x33   :  { %768 = vmatpush3.bf16.msra.mxu0 %v842_v23 }
  0x34   :  { %769 = vmatprep.subr.bf16.mxu0 %v886_v1 }
  0x37   :  { %770 = vmatpush3.bf16.msra.mxu0 %v843_v24 }
  0x38   :  { %771 = vmatprep.subr.bf16.mxu0 %v886_v1 }
  0x3b   :  { %772 = vmatpush3.bf16.msra.mxu0 %v844_v34 }
  0x3c   :  { %773 = vmatprep.subr.bf16.mxu0 %v886_v1 }
  0x3f   :  { %774 = vmatpush3.bf16.msra.mxu0 %v845_v35 }
  0x40   :  { %799 = vmatprep.subr.bf16.mxu0 %v886_v1 }
  0xf4   :  { %v147_v26 = vpop.f32.mrb[0].mxu0 }
  0xf5   :  { %v148_v27 = vadd.f32 %v629_v25, %v147_v26  ;;  %v737_v28 = vpop.f32.mrb[1].mxu0 }
  0xf6   :  { %v150_v29 = vpop.f32.mrb[2].mxu0 }
  0xf7   :  { %vm153_vm1 = vcmp.gt.f32.partialorder %v148_v27, 0.0  ;;  %v154_v30 = vmul.f32 0.01, %v148_v27  ;;  %v738_v31 = vpop.f32.mrb[3].mxu0 }
  0xf9   :  { %v155_v32 = vsel %vm153_vm1, %v148_v27, %v154_v30 }
  0xfa   :  { %v156_v33 = vpack.c.bf16 %v155_v32, %v155_v32 }
  0xfc   :  { %756 = vmatmul.mubr.bf16.vlgmr.msra.gmra.mrb[0].mxu1 %v156_v33 }
  0xfd   :  { %795 = vmatprep.mubr.msk.bf16.mxu1 %vm887_vm0, %v886_v1  ;;  %780 = vmatpush3.bf16.msra.mxu1 %v846_v36 }
  0xfe   :  { %781 = vmatprep.subr.bf16.mxu1 %v886_v1 }
 0x101   :  { %782 = vmatpush3.bf16.msra.mxu1 %v847_v37 }
 0x102   :  { %783 = vmatprep.subr.bf16.mxu1 %v886_v1 }
 0x105   :  { %784 = vmatpush3.bf16.msra.mxu1 %v848_v38 }
 0x106   :  { %785 = vmatprep.subr.bf16.mxu1 %v886_v1 }
 0x109   :  { %786 = vmatpush3.bf16.msra.mxu1 %v849_v39 }
 0x10a   :  { %787 = vmatprep.subr.bf16.mxu1 %v886_v1 }
 0x10d   :  { %788 = vmatpush3.bf16.msra.mxu1 %v850_v40 }
 0x10e   :  { %789 = vmatprep.subr.bf16.mxu1 %v886_v1 }
 0x111   :  { %790 = vmatpush3.bf16.msra.mxu1 %v851_v41 }
 0x112   :  { %791 = vmatprep.subr.bf16.mxu1 %v886_v1 }
 0x115   :  { %792 = vmatpush3.bf16.msra.mxu1 %v852_v51 }
 0x116   :  { %793 = vmatprep.subr.bf16.mxu1 %v886_v1 }
 0x119   :  { %794 = vmatpush3.bf16.msra.mxu1 %v853_v52 }
 0x1cf   :  { %v262_v43 = vpop.f32.mrb[0].mxu1 }
 0x1d0   :  { %v263_v44 = vadd.f32 %v638_v42, %v262_v43  ;;  %v757_v45 = vpop.f32.mrb[1].mxu1 }
 0x1d1   :  { %v265_v46 = vpop.f32.mrb[2].mxu1 }
 0x1d2   :  { %vm268_vm2 = vcmp.gt.f32.partialorder %v263_v44, 0.0  ;;  %v269_v47 = vmul.f32 0.01, %v263_v44  ;;  %v758_v48 = vpop.f32.mrb[3].mxu1 }
 0x1d4   :  { %v270_v49 = vsel %vm268_vm2, %v263_v44, %v269_v47 }
 0x1d5   :  { %v271_v50 = vpack.c.bf16 %v270_v49, %v270_v49 }
 0x1d7   :  { %776 = vmatmul.mubr.bf16.vlgmr.msra.gmra.mrb[4].mxu0 %v271_v50 }
 0x1d8   :  { %815 = vmatprep.mubr.msk.bf16.mxu0 %vm887_vm0, %v886_v1  ;;  %800 = vmatpush3.bf16.msra.mxu0 %v854_v53 }
 0x1d9   :  { %801 = vmatprep.subr.bf16.mxu0 %v886_v1 }
 0x1dc   :  { %802 = vmatpush3.bf16.msra.mxu0 %v855_v54 }
 0x1dd   :  { %803 = vmatprep.subr.bf16.mxu0 %v886_v1 }
 0x1e0   :  { %804 = vmatpush3.bf16.msra.mxu0 %v856_v55 }
 0x1e1   :  { %805 = vmatprep.subr.bf16.mxu0 %v886_v1 }
 0x1e4   :  { %806 = vmatpush3.bf16.msra.mxu0 %v857_v56 }
 0x1e5   :  { %807 = vmatprep.subr.bf16.mxu0 %v886_v1 }
 0x1e8   :  { %808 = vmatpush3.bf16.msra.mxu0 %v858_v57 }
 0x1e9   :  { %809 = vmatprep.subr.bf16.mxu0 %v886_v1 }
 0x1ec   :  { %810 = vmatpush3.bf16.msra.mxu0 %v859_v58 }
 0x1ed   :  { %811 = vmatprep.subr.bf16.mxu0 %v886_v1 }
 0x1f0   :  { %812 = vmatpush3.bf16.msra.mxu0 %v860_v5 }
 0x1f1   :  { %813 = vmatprep.subr.bf16.mxu0 %v886_v1  ;;  %v665_v1 = vld [vmem:[%s1159_s10] ss:$0 sm:$0xff] }
 0x1f4   :  { %814 = vmatpush3.bf16.msra.mxu0 %v861_v6 }
 0x2aa   :  { %v377_v60 = vpop.f32.mrb[4].mxu0 }
 0x2ab   :  { %v378_v61 = vadd.f32 %v647_v59, %v377_v60  ;;  %v777_v62 = vpop.f32.mrb[5].mxu0 }
 0x2ac   :  { %v380_v63 = vpop.f32.mrb[6].mxu0 }
 0x2ad   :  { %vm383_vm3 = vcmp.gt.f32.partialorder %v378_v61, 0.0  ;;  %v384_v0 = vmul.f32 0.01, %v378_v61  ;;  %v778_v2 = vpop.f32.mrb[7].mxu0 }
 0x2af   :  { %v385_v3 = vsel %vm383_vm3, %v378_v61, %v384_v0 }
 0x2b0   :  { %v386_v4 = vpack.c.bf16 %v385_v3, %v385_v3 }
 0x2b2   :  { %796 = vmatmul.mubr.bf16.vlgmr.msra.gmra.mrb[4].mxu1 %v386_v4 }
 0x385   :  { %v492_v8 = vpop.f32.mrb[4].mxu1 }
 0x386   :  { %v493_v9 = vadd.f32 %v656_v7, %v492_v8  ;;  %v797_v10 = vpop.f32.mrb[5].mxu1 }
 0x387   :  { %v495_v11 = vpop.f32.mrb[6].mxu1 }
 0x388   :  { %vm498_vm4 = vcmp.gt.f32.partialorder %v493_v9, 0.0  ;;  %v499_v12 = vmul.f32 0.01, %v493_v9  ;;  %v798_v13 = vpop.f32.mrb[7].mxu1 }
 0x38a   :  { %v500_v14 = vsel %vm498_vm4, %v493_v9, %v499_v12 }
 0x38b   :  { %v501_v15 = vpack.c.bf16 %v500_v14, %v500_v14 }
 0x38d   :  { %816 = vmatmul.mubr.bf16.vlgmr.msra.gmra.mrb[8].mxu0 %v501_v15 }
 0x460   :  { %v607_v16 = vpop.f32.mrb[8].mxu0 }
 0x461   :  { %v608_v17 = vadd.f32 %v665_v1, %v607_v16  ;;  %v817_v18 = vpop.f32.mrb[9].mxu0 }
 0x462   :  { %v610_v19 = vpop.f32.mrb[10].mxu0 }
 0x463   :  { %v818_v20 = vpop.f32.mrb[11].mxu0  ;;  %614 = vst.msk [vmem:[#allocation2] sm:$0xff] %vm613_vm5, %v608_v17 }
 0x464   :  { %873 = shalt.err (!%p870_p4)
}
 0x465   :  { %s874_s10 = scalar_lea.hbm %s1160_s11, 128 }
 0x466   :  { %p875_p5 = scmp.ne.s32.totalorder %s1160_s11, %s874_s10  ;;  %p878_p6 = scmp.lt.u32.totalorder %s874_s10, %s1160_s11 }
 0x468   :  { %p880_p7 = pnand %p878_p6, %p875_p5 }
 0x46a   :  { %883 = shalt.err (!%p880_p7)
}
 0x46b   :  { %624 = dma.vmem_to_hbm [thread:$0]  %s622_s17, 128, %s1160_s11, [#allocation3]  }
 0x46c   :  { %884 = dma.done.wait [#allocation3], 128  }
 0x46d   :  { %885 = vsyncadd [#allocation3], 4294967168 }
 0x46e   :  { %628 = vsyncpa [#allocation3], 1 }

</bundles_post_ra>
